<compile_context>
chip_gen: v6e
topology: v6e:2x2x1
jax: 0.10.0
libtpu: 0.0.40
codegen_flags: <defaults>
</compile_context>

<pallas_src>
import functools

import jax
import jax.numpy as jnp
from jax.experimental import pallas as pl
from jax.experimental.pallas import tpu as pltpu


def _distill_kl_kernel(ys_ref, yt_ref, out_ref, *, inv_t, scale, tile_b, batch,
                       need_mask):
    ys = ys_ref[...].astype(jnp.float32) * inv_t
    yt = yt_ref[...].astype(jnp.float32) * inv_t

    # Row-wise shifted logits (softmax stabilization).
    ys_sh = ys - jnp.max(ys, axis=1, keepdims=True)
    yt_sh = yt - jnp.max(yt, axis=1, keepdims=True)

    exp_s = jnp.exp(ys_sh)
    exp_t = jnp.exp(yt_sh)
    z_s = jnp.sum(exp_s, axis=1, keepdims=True)   # (tb, 1)
    z_t = jnp.sum(exp_t, axis=1, keepdims=True)   # (tb, 1)

    # kl_row = sum_c (exp_t / z_t) * ((yt_sh - ys_sh) + log(z_s / z_t))
    #        = (1/z_t) * sum_c exp_t * (yt_sh - ys_sh)  +  log(z_s / z_t)
    # Reciprocal applied per-row after the reduction; single fused log.
    inv_zt = pl.reciprocal(z_t, approx=False)      # (tb, 1)
    kl_rows = (jnp.sum(exp_t * (yt_sh - ys_sh), axis=1, keepdims=True) * inv_zt
               + jnp.log(z_s * inv_zt))            # (tb, 1)

    if need_mask:
        # Only the last (padded) block needs this; all math above is
        # row-independent so padded-row garbage (even NaN/Inf) cannot
        # contaminate valid rows — the select discards it here.
        i = pl.program_id(0)
        row = jax.lax.broadcasted_iota(jnp.int32, kl_rows.shape, 0)
        kl_rows = jnp.where((i * tile_b + row) < batch, kl_rows, 0.0)

    # Partial sum for this batch block, pre-scaled by T^2 / B.
    out_ref[0, 0] = jnp.sum(kl_rows) * scale


def _vmem_capacity_bytes():
    try:
        return int(pltpu.get_tpu_info().vmem_capacity_bytes)
    except Exception:
        return 128 << 20  # conservative default (v5e/v6e physical VMEM)


def _choose_tile_b(batch, n_classes, itemsize, vmem_bytes):
    # Sublane packing: f32 -> 8 rows, bf16 -> 16, int8/fp8 -> 32.
    sublane = max(8, 32 // max(1, itemsize))
    row_bytes = max(1, n_classes * itemsize)

    # Per-input buffer target: ~4-8 MiB (=> 2 inputs x 2 pipeline buffers of
    # 16-32 MiB total), scaled to the generation's VMEM capacity.
    target_bytes = max(4 << 20, min(8 << 20, vmem_bytes // 8))
    tb = max(sublane, (target_bytes // row_bytes) // sublane * sublane)

    # Megacore (v7x): keep at least 2 grid blocks when the batch allows it so
    # the "parallel" batch axis can shard across both TensorCores.
    if batch > sublane:
        half = ((pl.cdiv(batch, 2) + sublane - 1) // sublane) * sublane
        tb = min(tb, half)

    if tb >= batch:
        return batch  # single full-extent block (any B allowed)

    # Prefer a nearby tile that divides the batch: the masked last block
    # (iota/compare/select path) disappears entirely.
    lo = max(sublane, tb // 2)
    for d in range(tb, lo - 1, -sublane):
        if batch % d == 0:
            return d
    return tb


def distill_kl(y_s, y_t, temperature, *, tile_b=None):
    """KL distillation loss.

    y_s, y_t: (B, C) logits.  f32 or bf16 accepted — feed bf16 directly from
    the producer when available (halves HBM traffic; math is done in f32
    in-kernel).  Returns a scalar f32 loss matching the PyTorch DistillKL.
    """
    assert y_s.shape == y_t.shape and y_s.ndim == 2
    batch, n_classes = y_s.shape
    T = float(temperature)
    itemsize = jnp.dtype(y_s.dtype).itemsize
    vmem_bytes = _vmem_capacity_bytes()

    if tile_b is None:
        tile_b = _choose_tile_b(batch, n_classes, itemsize, vmem_bytes)
    tile_b = int(min(tile_b, batch))
    num_blocks = int(pl.cdiv(batch, tile_b))
    need_mask = (batch % tile_b) != 0

    kernel = functools.partial(
        _distill_kl_kernel,
        inv_t=1.0 / T,
        scale=(T * T) / float(batch),
        tile_b=tile_b,
        batch=batch,
        need_mask=need_mask,
    )

    # Raise the scoped-VMEM limit to fit 2 inputs x 2 pipeline buffers of the
    # chosen tile, with headroom, but never beyond ~90% of physical VMEM.
    tile_bytes = tile_b * n_classes * itemsize
    buffering = 4 * tile_bytes
    vmem_limit = int(min(int(0.9 * vmem_bytes),
                         max(32 << 20, buffering + (16 << 20))))

    cost = pl.CostEstimate(
        flops=int(10 * batch * n_classes),
        transcendentals=int(2 * batch * n_classes),
        bytes_accessed=int(2 * batch * n_classes * itemsize + 4 * num_blocks),
    )

    partials = pl.pallas_call(
        kernel,
        out_shape=jax.ShapeDtypeStruct((num_blocks, 1), jnp.float32),
        grid=(num_blocks,),
        in_specs=[
            pl.BlockSpec((tile_b, n_classes), lambda i: (i, 0)),
            pl.BlockSpec((tile_b, n_classes), lambda i: (i, 0)),
        ],
        out_specs=pl.BlockSpec((1, 1), lambda i: (i, 0), memory_space=pltpu.SMEM),
        compiler_params=pltpu.CompilerParams(
            dimension_semantics=("parallel",),
            vmem_limit_bytes=vmem_limit,
        ),
        cost_estimate=cost,
    )(y_s, y_t)

    # Tiny (num_blocks,) reduction outside the kernel (keeps the grid axis
    # fully parallel for megacore instead of forcing sequential accumulation).
    return jnp.sum(partials)


def _distill_kl_ref(y_s, y_t, T):
    # Pure-JAX reference matching the PyTorch module.
    log_p_s = jax.nn.log_softmax(y_s.astype(jnp.float32) / T, axis=1)
    p_t = jax.nn.softmax(y_t.astype(jnp.float32) / T, axis=1)
    log_p_t = jax.nn.log_softmax(y_t.astype(jnp.float32) / T, axis=1)
    return jnp.sum(p_t * (log_p_t - log_p_s)) * T * T / y_s.shape[0]


if __name__ == "__main__":
    T = 4.0
    key = jax.random.PRNGKey(0)
    k1, k2, k3, k4 = jax.random.split(key, 4)

    # Case 1: small single-block case (B=8, C=128), auto tile.
    B, C = 8, 128
    y_s = jax.random.normal(k1, (B, C), dtype=jnp.float32) * 2.0
    y_t = jax.random.normal(k2, (B, C), dtype=jnp.float32) * 2.0
    loss = jax.block_until_ready(distill_kl(y_s, y_t, T))
    ref = jax.block_until_ready(_distill_kl_ref(y_s, y_t, T))
    assert jnp.allclose(loss, ref, rtol=1e-5, atol=1e-5), (loss, ref)

    # Case 2: batch-tiled path with auto tile (B=40 -> 2 blocks, last padded).
    B2, C2 = 40, 256
    y_s2 = jax.random.normal(k3, (B2, C2), dtype=jnp.float32) * 2.0
    y_t2 = jax.random.normal(k4, (B2, C2), dtype=jnp.float32) * 2.0
    loss2 = jax.block_until_ready(distill_kl(y_s2, y_t2, T))
    ref2 = jax.block_until_ready(_distill_kl_ref(y_s2, y_t2, T))
    assert jnp.allclose(loss2, ref2, rtol=1e-5, atol=1e-5), (loss2, ref2)

    # Case 3: bf16 inputs + explicit non-dividing tile (forces masked path,
    # 3 grid blocks, bf16 sublane-aligned tile of 16).
    y_s3 = y_s2.astype(jnp.bfloat16)
    y_t3 = y_t2.astype(jnp.bfloat16)
    loss3 = jax.block_until_ready(distill_kl(y_s3, y_t3, T, tile_b=16))
    ref3 = jax.block_until_ready(_distill_kl_ref(y_s3, y_t3, T))
    assert jnp.allclose(loss3, ref3, rtol=5e-2, atol=5e-2), (loss3, ref3)

    print("KERNEL_OK")
</pallas_src>

<mosaic_0001>
module attributes {stable_mosaic.version = 11 : i64} {
  func.func @_distill_kl_kernel(%arg0: i32, %arg1: memref<8x128xf32, #tpu.memory_space<vmem>>, %arg2: memref<8x128xf32, #tpu.memory_space<vmem>>, %arg3: memref<1x1xf32, #tpu.memory_space<smem>>) attributes {dimension_semantics = [#tpu.dimension_semantics<parallel>], iteration_bounds = array<i64: 1>, scalar_prefetch = 0 : i64, scratch_operands = 0 : i64, tpu.core_type = #tpu.core_type<tc>, window_params = [{transform_indices = @transform_0, window_bounds = array<i64: 8, 128>}, {transform_indices = @transform_1, window_bounds = array<i64: 8, 128>}, {transform_indices = @transform_2, window_bounds = array<i64: 1, 1>}]} {
    %c0 = arith.constant 0 : index
    %c0_0 = arith.constant 0 : index
    %0 = vector.load %arg1[%c0, %c0_0] : memref<8x128xf32, #tpu.memory_space<vmem>>, vector<8x128xf32>
    %cst = arith.constant 2.500000e-01 : f32
    %1 = vector.broadcast %cst : f32 to vector<8x128xf32>
    %2 = arith.mulf %0, %1 : vector<8x128xf32>
    %c0_1 = arith.constant 0 : index
    %c0_2 = arith.constant 0 : index
    %3 = vector.load %arg2[%c0_1, %c0_2] : memref<8x128xf32, #tpu.memory_space<vmem>>, vector<8x128xf32>
    %cst_3 = arith.constant 2.500000e-01 : f32
    %4 = vector.broadcast %cst_3 : f32 to vector<8x128xf32>
    %5 = arith.mulf %3, %4 : vector<8x128xf32>
    %cst_4 = arith.constant dense<0xFF800000> : vector<8xf32>
    %6 = vector.multi_reduction <maximumf>, %2, %cst_4 [1] : vector<8x128xf32> to vector<8xf32>
    %7 = vector.shape_cast %6 : vector<8xf32> to vector<8x1xf32>
    %8 = vector.broadcast %7 : vector<8x1xf32> to vector<8x128xf32>
    %9 = arith.subf %2, %8 : vector<8x128xf32>
    %cst_5 = arith.constant dense<0xFF800000> : vector<8xf32>
    %10 = vector.multi_reduction <maximumf>, %5, %cst_5 [1] : vector<8x128xf32> to vector<8xf32>
    %11 = vector.shape_cast %10 : vector<8xf32> to vector<8x1xf32>
    %12 = vector.broadcast %11 : vector<8x1xf32> to vector<8x128xf32>
    %13 = arith.subf %5, %12 : vector<8x128xf32>
    %14 = math.exp %9 : vector<8x128xf32>
    %15 = math.exp %13 : vector<8x128xf32>
    %cst_6 = arith.constant dense<0.000000e+00> : vector<8xf32>
    %16 = vector.multi_reduction <add>, %14, %cst_6 [1] : vector<8x128xf32> to vector<8xf32>
    %17 = vector.shape_cast %16 : vector<8xf32> to vector<8x1xf32>
    %cst_7 = arith.constant dense<0.000000e+00> : vector<8xf32>
    %18 = vector.multi_reduction <add>, %15, %cst_7 [1] : vector<8x128xf32> to vector<8xf32>
    %19 = vector.shape_cast %18 : vector<8xf32> to vector<8x1xf32>
    %20 = tpu.reciprocal %19 : vector<8x1xf32> -> vector<8x1xf32>
    %21 = arith.subf %13, %9 : vector<8x128xf32>
    %22 = arith.mulf %15, %21 : vector<8x128xf32>
    %cst_8 = arith.constant dense<0.000000e+00> : vector<8xf32>
    %23 = vector.multi_reduction <add>, %22, %cst_8 [1] : vector<8x128xf32> to vector<8xf32>
    %24 = vector.shape_cast %23 : vector<8xf32> to vector<8x1xf32>
    %25 = arith.mulf %24, %20 : vector<8x1xf32>
    %26 = arith.mulf %17, %20 : vector<8x1xf32>
    %27 = math.log %26 : vector<8x1xf32>
    %28 = arith.addf %25, %27 : vector<8x1xf32>
    %29 = vector.shape_cast %28 : vector<8x1xf32> to vector<1x8x1xf32>
    %cst_9 = arith.constant dense<0.000000e+00> : vector<1xf32>
    %30 = vector.multi_reduction <add>, %29, %cst_9 [1, 2] : vector<1x8x1xf32> to vector<1xf32>
    %31 = vector.shape_cast %30 : vector<1xf32> to vector<1x1x1xf32>
    %32 = vector.extract %31[0, 0, 0] : f32 from vector<1x1x1xf32>
    %cst_10 = arith.constant 2.000000e+00 : f32
    %33 = arith.mulf %32, %cst_10 : f32
    %c0_11 = arith.constant 0 : index
    %c0_12 = arith.constant 0 : index
    %34 = memref.load %arg3[%c0_11, %c0_12] : memref<1x1xf32, #tpu.memory_space<smem>>
    memref.store %33, %arg3[%c0_11, %c0_12] : memref<1x1xf32, #tpu.memory_space<smem>>
    return
  }
  func.func @transform_0(%arg0: i32) -> (i32, i32) {
    %c0_i32 = arith.constant 0 : i32
    %c0_i32_0 = arith.constant 0 : i32
    return %arg0, %c0_i32 : i32, i32
  }
  func.func @transform_1(%arg0: i32) -> (i32, i32) {
    %c0_i32 = arith.constant 0 : i32
    %c0_i32_0 = arith.constant 0 : i32
    return %arg0, %c0_i32 : i32, i32
  }
  func.func @transform_2(%arg0: i32) -> (i32, i32) {
    %c0_i32 = arith.constant 0 : i32
    %c0_i32_0 = arith.constant 0 : i32
    return %arg0, %c0_i32 : i32, i32
  }
}

</mosaic_0001>

<bundles_post_ra>
// kernel: tpu_custom_call.1
= control target key start
LH: loop header
LB: loop body
LE: loop exit
PB: predicated region body
PF: predicated region fallthrough
CT: control target
= control target key end

     0   :  { %7 = vsyncpa [#allocation3], 0  ;;  %s187_s0 = inlined_call_operand.hbm [shape: f32[8,128], index: 0, kind: input, shape index: {}]   ;;  %s188_s1 = inlined_call_operand.hbm [shape: f32[8,128], index: 1, kind: input, shape index: {}]   ;;  %s189_s2 = inlined_call_operand.hbm [shape: f32[1,1], index: 2, kind: output, shape index: {}]  }
   0x1   :  { %8 = vsyncpa [#allocation6], 0 }
   0x2   :  { %9 = vsyncpa [#allocation4], 0  ;;  %s160_s9 = smov [#allocation2]   ;;  %s161_s11 = smov [#allocation5]  }
   0x3   :  { %s16_s10 = sshll.u32 %s160_s9, 4  ;;  %s26_s12 = sshll.u32 %s161_s11, 4  ;;  %s17_s10 = int_to_ptr.vmem [resolvable:$true] %s16_s10  ;;  %s27_s12 = int_to_ptr.vmem [resolvable:$true] %s26_s12 }
   0x4   :  { %s114_s13 = scalar_lea.vmem %s17_s10, 128  ;;  %p119_p1 = scmp.lt.s32.totalorder %s17_s10, %s17_s10 }
   0x5   :  { %p115_p0 = scmp.ne.s32.totalorder %s17_s10, %s114_s13  ;;  %p120_p2 = scmp.lt.s32.totalorder %s114_s13, %s114_s13 }
   0x7   :  { %p121_p3 = por %p120_p2, %p119_p1 }
   0x9   :  { %p122_p4 = pnand %p121_p3, %p115_p0 }
   0xb   :  { %125 = shalt.err (!%p122_p4)
}
   0xc   :  { %19 = dma.hbm_to_vmem [thread:$0]  %s187_s0, 128, %s17_s10, [#allocation3]  }
   0xd   :  { %s134_s16 = scalar_lea.vmem %s27_s12, 128  ;;  %p139_p6 = scmp.lt.s32.totalorder %s27_s12, %s27_s12 }
   0xe   :  { %p135_p5 = scmp.ne.s32.totalorder %s27_s12, %s134_s16  ;;  %p140_p7 = scmp.lt.s32.totalorder %s134_s16, %s134_s16 }
  0x10   :  { %p141_p8 = por %p140_p7, %p139_p6 }
  0x12   :  { %p142_p9 = pnand %p141_p8, %p135_p5 }
  0x14   :  { %145 = shalt.err (!%p142_p9)
}
  0x15   :  { %29 = dma.hbm_to_vmem [thread:$0]  %s188_s1, 128, %s27_s12, [#allocation6]  }
  0x16   :  { %154 = dma.done.wait [#allocation3], 128  }
  0x17   :  { %155 = vsyncadd [#allocation3], 4294967168 }
  0x18   :  { %156 = dma.done.wait [#allocation6], 128  }
  0x19   :  { %157 = vsyncadd [#allocation6], 4294967168  ;;  %v38_v0 = vld [vmem:[#allocation5] sm:$0xff]  ;;  %v36_v1 = vld [vmem:[#allocation2] sm:$0xff]  ;;  %vm64_vm0 = vcmask 7168   ;;  %s162_s19 = smov [#allocation7]  }
  0x1a   :  { %v39_v2 = vmul.f32 0.25, %v38_v0  ;;  %v37_v3 = vmul.f32 0.25, %v36_v1 }
  0x1c   :  { %43 = vmax.xlane.f32.xlu0 %v39_v2 }
  0x20   :  { %40 = vmax.xlane.f32.xlu0 %v37_v3 }
  0xa5   :  { %v44_v4 = vpop.xlane.xlu0 %43 }
  0xa6   :  { %v45_v5 = vsub.f32 %v39_v2, %v44_v4 }
  0xa8   :  { %v48_v6 = vmul.f32 1.442695, %v45_v5 }
  0xa9   :  { %v41_v7 = vpop.xlane.xlu0 %40 }
  0xaa   :  { %98 = vpow2.f32 %v48_v6  ;;  %v42_v8 = vsub.f32 %v37_v3, %v41_v7 }
  0xac   :  { %v46_v9 = vmul.f32 1.442695, %v42_v8  ;;  %v55_v10 = vsub.f32 %v45_v5, %v42_v8 }
  0xae   :  { %100 = vpow2.f32 %v46_v9 }
  0xb7   :  { %v99_v11 = vpop.eup %98 }
  0xb8   :  { %52 = vadd.xlane.f32.xlu1 %v99_v11  ;;  %v56_v12 = vmul.f32 %v99_v11, %v55_v10 }
  0xba   :  { %57 = vadd.xlane.f32.xlu0 %v56_v12 }
  0xbb   :  { %v101_v13 = vpop.eup %100 }
  0xbc   :  { %50 = vadd.xlane.f32.xlu1 %v101_v13 }
 0x141   :  { %v53_v14 = vpop.xlane.xlu1 %52 }
 0x142   :  { %102 = vrcp.f32 %v53_v14 }
 0x143   :  { %v58_v19 = vpop.xlane.xlu0 %57 }
 0x145   :  { %v51_v15 = vpop.xlane.xlu1 %50 }
 0x14f   :  { %v103_v16 = vpop.eup %102 }
 0x150   :  { %v60_v17 = vmul.f32 %v103_v16, %v51_v15  ;;  %v59_v20 = vmul.f32 %v103_v16, %v58_v19 }
 0x152   :  { %104 = vlog2.f32 %v60_v17 }
 0x15f   :  { %v105_v18 = vpop.eup %104 }
 0x160   :  { %v62_v21 = vmul.f32 0.6931472, %v105_v18 }
 0x162   :  { %v63_v22 = vadd.f32 %v62_v21, %v59_v20 }
 0x164   :  { %v65_v23 = vsel %vm64_vm0, %v63_v22, 0.0 }
 0x165   :  { %66 = vadd.xlane.f32.xlu1 %v65_v23 }
 0x1ee   :  { %v67_v24 = vpop.xlane.xlu1 %66 }
 0x1ef   :  { %v68_v25 = vrot.slane %v67_v24, 4 }
 0x1f1   :  { %v69_v26 = vadd.f32 %v68_v25, %v67_v24 }
 0x1f3   :  { %v70_v27 = vrot.slane %v69_v26, 2 }
 0x1f5   :  { %v71_v28 = vadd.f32 %v70_v27, %v69_v26 }
 0x1f7   :  { %v72_v29 = vrot.slane %v71_v28, 1 }
 0x1f9   :  { %v73_v30 = vadd.f32 %v72_v29, %v71_v28 }
 0x1fb   :  { %93 = vpush %v73_v30 }
 0x22c   :  { %s94_s0 = spop %93 }
 0x22d   :  { %s75_s1 = smul.f32 2.0, %s94_s0 }
 0x22f   :  { %77 = sst [smem:[#allocation7]] %s75_s1 }
 0x230   :  { %85 = dma.smem_to_hbm %s162_s19, 16, %s189_s2, [#allocation4]  }
 0x231   :  { %158 = dma.done.wait [#allocation4], 16  }
 0x232   :  { %159 = vsyncadd [#allocation4], 4294967280 }
 0x233   :  { %89 = sfence }
 0x234   :  { %90 = vsyncpa [#allocation3], 1 }
 0x235   :  { %91 = vsyncpa [#allocation6], 1 }
 0x236   :  { %92 = vsyncpa [#allocation4], 1 }

</bundles_post_ra>
